<compile_context>
chip_gen: v7x
topology: tpu7x:2x2x1
jax: 0.10.0
libtpu: 0.0.40
codegen_flags: <defaults>
</compile_context>

<pallas_src>
import jax
import jax.numpy as jnp
from jax.experimental import pallas as pl
from jax.experimental.pallas import tpu as pltpu


def _value_head_kernel(x_ref, w_ref, b_ref, o_ref):
    # x_ref: [TM, H] activation tile (VMEM)
    # w_ref: [H, 1]  value-head weight, resident across the grid (VMEM)
    # b_ref: [1]     value-head bias (SMEM scalar)
    # o_ref: [TM, 1] per-token scalar value
    acc = jnp.dot(x_ref[...], w_ref[...], preferred_element_type=jnp.float32)
    o_ref[...] = (acc + b_ref[0]).astype(o_ref.dtype)


def _choose_tm(M, H, itemsize):
    """Pick a row-tile size whose double-buffered x tile fits every
    generation's default scoped VMEM (v5e: 16 MiB)."""
    per_buffer_budget = 6 * 1024 * 1024  # bytes per x buffer (x2 for dbl-buf)
    tm = per_buffer_budget // max(1, H * itemsize)
    tm = min(tm, 1024, M)
    if tm >= M:
        return M                      # single full-extent block
    return max(8, (tm // 8) * 8)      # sublane-aligned tile


def value_model_forward(hidden_states, weight, bias):
    """Pallas equivalent of MockValueModel.forward.

    hidden_states: [B, S, H]  (f32 or bf16; accumulation is always f32)
    weight:        [1, H] (PyTorch nn.Linear layout) or [H, 1]
    bias:          [1]
    returns dict with 'values': [B, S]
    """
    B, S, H = hidden_states.shape
    M = B * S
    x2d = hidden_states.reshape(M, H)
    w_col = weight if weight.shape == (H, 1) else weight.T          # -> [H, 1]
    w_col = w_col.astype(hidden_states.dtype)
    b1d = bias.reshape(1).astype(jnp.float32)

    itemsize = jnp.dtype(hidden_states.dtype).itemsize
    TM = _choose_tm(M, H, itemsize)
    grid = (pl.cdiv(M, TM),)

    cost = pl.CostEstimate(
        flops=2 * M * H,
        transcendentals=0,
        bytes_accessed=M * H * itemsize + H * itemsize + M * itemsize,
    )

    out = pl.pallas_call(
        _value_head_kernel,
        out_shape=jax.ShapeDtypeStruct((M, 1), hidden_states.dtype),
        grid_spec=pl.GridSpec(
            grid=grid,
            in_specs=[
                pl.BlockSpec((TM, H), lambda i: (i, 0)),            # streamed
                pl.BlockSpec((H, 1), lambda i: (0, 0)),             # resident
                pl.BlockSpec(memory_space=pltpu.MemorySpace.SMEM),  # scalar bias
            ],
            out_specs=pl.BlockSpec((TM, 1), lambda i: (i, 0)),
        ),
        compiler_params=pltpu.CompilerParams(
            dimension_semantics=("parallel",),   # shards M across v7x's 2 TCs
        ),
        cost_estimate=cost,
    )(x2d, w_col, b1d)

    values = out.reshape(B, S)  # squeeze(-1) + unflatten (glue)
    return {"values": values}


if __name__ == "__main__":
    # Small shapes consistent with the module: batch=2, seq=8, hidden=32.
    B, S, H = 2, 8, 32
    key = jax.random.PRNGKey(0)
    k_x, k_w, k_b = jax.random.split(key, 3)

    hidden_states = jax.random.normal(k_x, (B, S, H), dtype=jnp.float32)

    # Deterministic nn.Linear-style init: U(-1/sqrt(H), 1/sqrt(H)).
    bound = 1.0 / (H ** 0.5)
    weight = jax.random.uniform(k_w, (1, H), dtype=jnp.float32,
                                minval=-bound, maxval=bound)
    bias = jax.random.uniform(k_b, (1,), dtype=jnp.float32,
                              minval=-bound, maxval=bound)

    out = value_model_forward(hidden_states, weight, bias)
    values = jax.block_until_ready(out["values"])

    # Reference check in plain JAX (same math as torch's Linear + squeeze).
    ref = (hidden_states.reshape(B * S, H) @ weight.T + bias).reshape(B, S)
    assert values.shape == (B, S)
    assert jnp.allclose(values, ref, atol=1e-5, rtol=1e-5)

    print("KERNEL_OK")
</pallas_src>

<mosaic_0001>
module attributes {stable_mosaic.version = 11 : i64} {
  func.func @_value_head_kernel(%arg0: i32, %arg1: memref<16x32xf32, #tpu.memory_space<vmem>>, %arg2: memref<32x1xf32, #tpu.memory_space<vmem>>, %arg3: memref<1xf32, #tpu.memory_space<smem>>, %arg4: memref<16x1xf32, #tpu.memory_space<vmem>>) attributes {dimension_semantics = [#tpu.dimension_semantics<parallel>], iteration_bounds = array<i64: 1>, scalar_prefetch = 0 : i64, scratch_operands = 0 : i64, tpu.core_type = #tpu.core_type<tc>, window_params = [{transform_indices = @transform_0, window_bounds = array<i64: 16, 32>}, {pipeline_mode = #tpu.pipeline_mode<synchronous>, transform_indices = @transform_1, window_bounds = array<i64: 32, 1>}, {transform_indices = @transform_2, window_bounds = array<i64: 1>}, {transform_indices = @transform_3, window_bounds = array<i64: 16, 1>}]} {
    %c0 = arith.constant 0 : index
    %c0_0 = arith.constant 0 : index
    %0 = vector.load %arg1[%c0, %c0_0] : memref<16x32xf32, #tpu.memory_space<vmem>>, vector<16x32xf32>
    %c0_1 = arith.constant 0 : index
    %c0_2 = arith.constant 0 : index
    %1 = vector.load %arg2[%c0_1, %c0_2] : memref<32x1xf32, #tpu.memory_space<vmem>>, vector<32x1xf32>
    %cst = arith.constant dense<0.000000e+00> : vector<16x1xf32>
    %2 = tpu.matmul %0, %1, %cst {dimension_numbers = #tpu.dot_dimension_numbers<[1], [0], [0], [1], [0, 0, 1, 1], [], []>} : vector<16x32xf32>, vector<32x1xf32>, vector<16x1xf32> -> vector<16x1xf32>
    %c0_3 = arith.constant 0 : index
    %3 = memref.load %arg3[%c0_3] : memref<1xf32, #tpu.memory_space<smem>>
    %4 = vector.broadcast %3 : f32 to vector<16x1xf32>
    %5 = arith.addf %2, %4 : vector<16x1xf32>
    %c0_4 = arith.constant 0 : index
    %c0_5 = arith.constant 0 : index
    %6 = vector.load %arg4[%c0_4, %c0_5] : memref<16x1xf32, #tpu.memory_space<vmem>>, vector<16x1xf32>
    tpu.vector_store %arg4[%c0_4, %c0_5], %5 {strides = array<i32>} : memref<16x1xf32, #tpu.memory_space<vmem>>, vector<16x1xf32>,
    return
  }
  func.func @transform_0(%arg0: i32) -> (i32, i32) {
    %c0_i32 = arith.constant 0 : i32
    %c0_i32_0 = arith.constant 0 : i32
    return %arg0, %c0_i32 : i32, i32
  }
  func.func @transform_1(%arg0: i32) -> (i32, i32) {
    %c0_i32 = arith.constant 0 : i32
    %c0_i32_0 = arith.constant 0 : i32
    %c0_i32_1 = arith.constant 0 : i32
    return %c0_i32, %c0_i32_0 : i32, i32
  }
  func.func @transform_2(%arg0: i32) -> i32 {
    %c0_i32 = arith.constant 0 : i32
    %c0_i32_0 = arith.constant 0 : i32
    return %c0_i32 : i32
  }
  func.func @transform_3(%arg0: i32) -> (i32, i32) {
    %c0_i32 = arith.constant 0 : i32
    %c0_i32_0 = arith.constant 0 : i32
    return %arg0, %c0_i32 : i32, i32
  }
}

</mosaic_0001>

<bundles_post_ra>
// kernel: tpu_custom_call.1
= control target key start
LH: loop header
LB: loop body
LE: loop exit
PB: predicated region body
PF: predicated region fallthrough
CT: control target
= control target key end

     0   :  { %vm23_vm0 = vcmask 261120   ;;  %vm105_vm1 = vcmask 7168   ;;  %s186_s1 = inlined_call_operand.vmem [shape: f32[32,1], index: 1, kind: input, shape index: {}]   ;;  %s187_s0 = inlined_call_operand.vmem [shape: f32[16,32], index: 0, kind: input, shape index: {}]   ;;  %s188_s2 = inlined_call_operand.<no memory space> [shape: f32[1], index: 2, kind: input, shape index: {}]   ;;  %s189_s3 = inlined_call_operand.vmem [shape: f32[16,1], index: 3, kind: output, shape index: {}]  }
   0x1   :  { %v17_v0 = vld [vmem:[%s186_s1] sm:$0xff]  ;;  %v18_v1 = vld [vmem:[%s186_s1 + $0x8] sm:$0xff]  ;;  %v19_v2 = vld [vmem:[%s186_s1 + $0x10] sm:$0xff]  ;;  %v22_v8 = vstv %s188_s2 }
   0x2   :  { %v131_v3 = vpack.c.bf16 %v18_v1, %v17_v0  ;;  %v20_v4 = vld [vmem:[%s186_s1 + $0x18] sm:$0xff]  ;;  %v15_v5 = vld [vmem:[%s187_s0] sm:$0xff]  ;;  %v16_v7 = vld [vmem:[%s187_s0 + $0x8] sm:$0xff] }
   0x3   :  { %v135_v6 = vpack.c.bf16 %v20_v4, %v19_v2  ;;  %128 = vmatprep.mubr.msk.f32.mxu0 %vm23_vm0, %v15_v5 }
   0x4   :  { %132 = vmatprep.subr.bf16.mxu0 %v131_v3 }
   0x5   :  { %134 = vmatpush3.bf16.msra.mxu0 %v131_v3 }
   0x6   :  { %136 = vmatprep.subr.bf16.mxu0 %v135_v6 }
   0x9   :  { %138 = vmatpush3.bf16.msra.mxu0 %v135_v6 }
   0xc   :  { %129 = vmatmul.mubr.msk.f32.vlgmr.msra.gmra.mrb[0].mxu0 %vm23_vm0, %v16_v7 }
  0xdf   :  { %v130_v9 = vpop.f32.mrb[0].mxu0 }
  0xe0   :  { %v102_v10 = vadd.f32 %v130_v9, %v22_v8  ;;  %v96_v11 = vpop.f32.mrb[1].mxu0 }
  0xe1   :  { %v97_v12 = vadd.f32 %v96_v11, %v22_v8 }
  0xe2   :  { %107 = vst.msk [vmem:[%s189_s3 + $0x8] sm:$0xff] %vm105_vm1, %v102_v10 }
  0xe3   :  { %106 = vst.msk [vmem:[%s189_s3] sm:$0xff] %vm105_vm1, %v97_v12 }

</bundles_post_ra>
